<compile_context>
chip_gen: v5e
topology: v5e:2x2
jax: 0.10.0
libtpu: 0.0.40
codegen_flags: <defaults>
</compile_context>

<pallas_src>
import math

import jax
import jax.numpy as jnp
import numpy as np
from jax.experimental import pallas as pl
from jax.experimental.pallas import tpu as pltpu

_PI = 3.141592653589793


def _fpe_kernel(x_ref, expand_ref, sig_ref, phase_ref, o_ref):
    # x_ref:      (tm, Dg)   fused input rows (Dg = G*D3)
    # expand_ref: (Dg, Ng)   one-hot block-diagonal lane-expansion matrix
    # sig_ref:    (1, Ng)    tiled sigma pattern
    # phase_ref:  (1, Ng)    0.0 for the sin half, pi/2 for the cos half
    # o_ref:      (tm, Ng)
    x_rep = jnp.dot(x_ref[...], expand_ref[...],
                    preferred_element_type=jnp.float32)   # exact lane broadcast
    o_ref[...] = jnp.sin(x_rep * sig_ref[...] + phase_ref[...]).astype(o_ref.dtype)


def fixed_positional_encoding(x, proj_dims, *, target_tm=256, out_dtype=jnp.float32):
    """x: (B, D1, D2, D3) float32 -> (B, D1, D2, D3 * 2 * (proj_dims // 2)).

    out_dtype=jnp.bfloat16 is supported if downstream accepts it (halves the
    HBM write traffic of this write-dominated kernel); default f32 for parity.
    """
    B, D1, D2, D3 = x.shape
    ll = proj_dims // 2
    N = D3 * 2 * ll
    M = B * D1 * D2

    # --- lane fusion: fold G rows into features so the output last dim is a
    # multiple of 128 (lane-dense stores). ---
    if N % 128 == 0:
        G = 1
    else:
        G = 128 // math.gcd(N, 128)
    Dg = G * D3
    Ng = G * N
    M_g = pl.cdiv(M, G)

    # --- row-tile sizing: VMEM budget for double-buffered in+out blocks, and
    # at least 2 grid steps when possible (2 TensorCores on v7x). ---
    row_bytes = 4 * (Dg + Ng)
    vmem_budget = 20 * 1024 * 1024
    tm = min(target_tm, max(8, (vmem_budget // (2 * row_bytes)) // 8 * 8))
    if M_g > 8:
        steps = max(2, pl.cdiv(M_g, tm))
        tm = max(8, ((pl.cdiv(M_g, steps) + 7) // 8) * 8)
    else:
        tm = 8
    M_g_pad = pl.cdiv(M_g, tm) * tm
    M_pad = M_g_pad * G

    # --- host-side constant setup (glue). ---
    c = np.arange(Ng)
    cN = c % N                                          # column within original N
    src_col = (c // N) * D3 + (cN // (2 * ll))          # fused input column feeding c
    expand = (np.arange(Dg)[:, None] == src_col[None, :]).astype(np.float32)  # (Dg, Ng)
    sigma = _PI * np.power(2.0, np.linspace(0.0, ll - 1, ll))
    sig_pat = sigma[cN % ll][None, :].astype(np.float32)                      # (1, Ng)
    phase = np.where((cN % (2 * ll)) < ll, 0.0, _PI / 2.0).astype(np.float32)[None, :]

    x_flat = x.reshape(M, D3).astype(jnp.float32)
    if M_pad != M:
        x_flat = jnp.pad(x_flat, ((0, M_pad - M), (0, 0)))
    x_fused = x_flat.reshape(M_g_pad, Dg)               # contiguous, exact

    out_fused = pl.pallas_call(
        _fpe_kernel,
        out_shape=jax.ShapeDtypeStruct((M_g_pad, Ng), out_dtype),
        grid_spec=pltpu.PrefetchScalarGridSpec(
            num_scalar_prefetch=0,
            grid=(M_g_pad // tm,),
            in_specs=[
                pl.BlockSpec((tm, Dg), lambda i: (i, 0)),
                pl.BlockSpec((Dg, Ng), lambda i: (0, 0)),   # resident constants
                pl.BlockSpec((1, Ng), lambda i: (0, 0)),
                pl.BlockSpec((1, Ng), lambda i: (0, 0)),
            ],
            out_specs=pl.BlockSpec((tm, Ng), lambda i: (i, 0)),
        ),
        compiler_params=pltpu.CompilerParams(
            dimension_semantics=("parallel",),
            vmem_limit_bytes=48 * 1024 * 1024,
        ),
    )(x_fused, jnp.asarray(expand), jnp.asarray(sig_pat), jnp.asarray(phase))

    out_flat = out_fused.reshape(M_pad, N)[:M]          # contiguous, exact
    return out_flat.reshape(B, D1, D2, N)


def _reference(x, proj_dims):
    ll = proj_dims // 2
    sigma = _PI * jnp.power(2.0, jnp.linspace(0.0, ll - 1, ll))   # (ll,)
    prod = x[..., None] * sigma[None, None, None, None, :]        # (B,D1,D2,D3,ll)
    out = jnp.concatenate([jnp.sin(prod), jnp.cos(prod)], axis=-1)
    return out.reshape(x.shape[0], x.shape[1], x.shape[2], -1)


if __name__ == "__main__":
    key = jax.random.PRNGKey(0)
    B, D1, D2, D3 = 2, 4, 8, 4          # input_dims = D3 = 4
    proj_dims = 8                       # ll = 4, output feature dim = D3*2*ll = 32

    # TODO(synk): the parent-class `self.proj` MLP is declared in __init__ but never
    # used by FixedPositionalEncoding.forward, so it is not part of the kernel.
    x = jax.random.normal(key, (B, D1, D2, D3), jnp.float32)

    out = fixed_positional_encoding(x, proj_dims)
    out = jax.block_until_ready(out)

    ref = _reference(x, proj_dims)
    assert out.shape == (B, D1, D2, D3 * proj_dims), out.shape
    # cos(a) is computed as sin(a + pi/2): differs from the reference cos by
    # ~1-2 ulp of the (f32) argument; 2e-5 absolute tolerance covers that.
    assert np.allclose(np.asarray(out), np.asarray(ref), atol=2e-5, rtol=2e-5)

    print("KERNEL_OK")
</pallas_src>

<mosaic_0001>
module attributes {stable_mosaic.version = 11 : i64} {
  func.func @_fpe_kernel(%arg0: i32, %arg1: memref<8x16xf32, #tpu.memory_space<vmem>>, %arg2: memref<16x128xf32, #tpu.memory_space<vmem>>, %arg3: memref<1x128xf32, #tpu.memory_space<vmem>>, %arg4: memref<1x128xf32, #tpu.memory_space<vmem>>, %arg5: memref<8x128xf32, #tpu.memory_space<vmem>>) attributes {dimension_semantics = [#tpu.dimension_semantics<parallel>], iteration_bounds = array<i64: 2>, scalar_prefetch = 0 : i64, scratch_operands = 0 : i64, tpu.core_type = #tpu.core_type<tc>, window_params = [{transform_indices = @transform_0, window_bounds = array<i64: 8, 16>}, {pipeline_mode = #tpu.pipeline_mode<synchronous>, transform_indices = @transform_1, window_bounds = array<i64: 16, 128>}, {pipeline_mode = #tpu.pipeline_mode<synchronous>, transform_indices = @transform_2, window_bounds = array<i64: 1, 128>}, {pipeline_mode = #tpu.pipeline_mode<synchronous>, transform_indices = @transform_3, window_bounds = array<i64: 1, 128>}, {transform_indices = @transform_4, window_bounds = array<i64: 8, 128>}]} {
    %c0 = arith.constant 0 : index
    %c0_0 = arith.constant 0 : index
    %0 = vector.load %arg1[%c0, %c0_0] : memref<8x16xf32, #tpu.memory_space<vmem>>, vector<8x16xf32>
    %c0_1 = arith.constant 0 : index
    %c0_2 = arith.constant 0 : index
    %1 = vector.load %arg2[%c0_1, %c0_2] : memref<16x128xf32, #tpu.memory_space<vmem>>, vector<16x128xf32>
    %cst = arith.constant dense<0.000000e+00> : vector<8x128xf32>
    %2 = tpu.matmul %0, %1, %cst {dimension_numbers = #tpu.dot_dimension_numbers<[1], [0], [0], [1], [0, 0, 1, 1], [], []>} : vector<8x16xf32>, vector<16x128xf32>, vector<8x128xf32> -> vector<8x128xf32>
    %c0_3 = arith.constant 0 : index
    %c0_4 = arith.constant 0 : index
    %3 = vector.load %arg3[%c0_3, %c0_4] : memref<1x128xf32, #tpu.memory_space<vmem>>, vector<1x128xf32>
    %4 = vector.broadcast %3 : vector<1x128xf32> to vector<8x128xf32>
    %5 = arith.mulf %2, %4 : vector<8x128xf32>
    %c0_5 = arith.constant 0 : index
    %c0_6 = arith.constant 0 : index
    %6 = vector.load %arg4[%c0_5, %c0_6] : memref<1x128xf32, #tpu.memory_space<vmem>>, vector<1x128xf32>
    %7 = vector.broadcast %6 : vector<1x128xf32> to vector<8x128xf32>
    %8 = arith.addf %5, %7 : vector<8x128xf32>
    %9 = math.sin %8 : vector<8x128xf32>
    %c0_7 = arith.constant 0 : index
    %c0_8 = arith.constant 0 : index
    %10 = vector.load %arg5[%c0_7, %c0_8] : memref<8x128xf32, #tpu.memory_space<vmem>>, vector<8x128xf32>
    tpu.vector_store %arg5[%c0_7, %c0_8], %9 {strides = array<i32>} : memref<8x128xf32, #tpu.memory_space<vmem>>, vector<8x128xf32>,
    return
  }
  func.func @transform_0(%arg0: i32) -> (i32, i32) {
    %c0_i32 = arith.constant 0 : i32
    %c0_i32_0 = arith.constant 0 : i32
    return %arg0, %c0_i32 : i32, i32
  }
  func.func @transform_1(%arg0: i32) -> (i32, i32) {
    %c0_i32 = arith.constant 0 : i32
    %c0_i32_0 = arith.constant 0 : i32
    %c0_i32_1 = arith.constant 0 : i32
    return %c0_i32, %c0_i32_0 : i32, i32
  }
  func.func @transform_2(%arg0: i32) -> (i32, i32) {
    %c0_i32 = arith.constant 0 : i32
    %c0_i32_0 = arith.constant 0 : i32
    %c0_i32_1 = arith.constant 0 : i32
    return %c0_i32, %c0_i32_0 : i32, i32
  }
  func.func @transform_3(%arg0: i32) -> (i32, i32) {
    %c0_i32 = arith.constant 0 : i32
    %c0_i32_0 = arith.constant 0 : i32
    %c0_i32_1 = arith.constant 0 : i32
    return %c0_i32, %c0_i32_0 : i32, i32
  }
  func.func @transform_4(%arg0: i32) -> (i32, i32) {
    %c0_i32 = arith.constant 0 : i32
    %c0_i32_0 = arith.constant 0 : i32
    return %arg0, %c0_i32 : i32, i32
  }
}

</mosaic_0001>

<bundles_post_ra>
// kernel: tpu_custom_call.1
= control target key start
LH: loop header
LB: loop body
LE: loop exit
PB: predicated region body
PF: predicated region fallthrough
CT: control target
= control target key end

     0   :  { %9 = vsyncpa [#allocation3], 0  ;;  %s976_s0 = inlined_call_operand.hbm [shape: f32[16,16], index: 0, kind: input, shape index: {}]   ;;  %s977_s1 = inlined_call_operand.hbm [shape: f32[16,128], index: 1, kind: input, shape index: {}]   ;;  %s978_s2 = inlined_call_operand.vmem [shape: f32[1,128], index: 2, kind: input, shape index: {}]   ;;  %s979_s3 = inlined_call_operand.vmem [shape: f32[1,128], index: 3, kind: input, shape index: {}]   ;;  %s980_s4 = inlined_call_operand.hbm [shape: f32[16,128], index: 4, kind: output, shape index: {}]  }
   0x1   :  { %11 = vsyncpa [#allocation3 + $0x1], 0 }
   0x2   :  { %12 = vsyncpa [#allocation6], 0 }
   0x3   :  { %13 = vsyncpa [#allocation4], 0 }
   0x4   :  { %15 = vsyncpa [#allocation4 + $0x1], 0  ;;  %s774_s15 = smov 0   ;;  %s776_s16 = smov 0  }
   0x5   :  { %s778_s17 = smov 0   ;;  %s780_s18 = smov 0  }
   0x6 LB: > { %s152_s21 = sshll.u32 %s977_s1, 4  ;;  %s798_s22 = sadd.s32 4294967295, %s737_s18   ;;  %s737_s18 = sphi %s780_s18, %s990_s18   ;;  %s733_s17 = sphi %s778_s17, %s989_s17   ;;  %s729_s16 = sphi %s776_s16, %s988_s16   ;;  %s725_s15 = sphi %s774_s15, %s987_s15   ;;  %s153_s21 = int_to_ptr.hbm [resolvable:$true] %s152_s21 }
   0x7   : > { %p522_p0 = scmp.ge.s32.totalorder %s737_s18, 1  ;;  %p42_p1 = scmp.eq.s32.totalorder %s798_s22, 0 }
   0x8   : > { %p141_p2 = scmp.lt.s32.totalorder %s737_s18, 3  ;;  %s739_s24 = smov [#allocation5]  }
   0x9   : > { %s154_s25 = sshll.u32 %s739_s24, 4  ;;  %s740_s26 = smov 128   ;;  %s155_s25 = int_to_ptr.vmem [resolvable:$true] %s154_s25 }
   0xa   : > { %p803_p3 = pnand %p522_p0, %p141_p2  ;;  %s741_s27 = smov 8  }
   0xb   : > { %s521_s28 = sadd.s32 4294967294, %s737_s18   ;;  %s814_s29 = sadd.s32 1, %s737_s18  }
   0xc   : > { %p547_p4 = pneg %p803_p3  ;;  %s28_s30 = sadd.s32 1, %s733_s17 }
   0xd   : > { %s25_s5 = ssub.s32 %s737_s18, %s814_s29  ;;  %p35_p7 = scmp.ne.s32.totalorder %s733_s17, %s729_s16 }
   0xe   : > { %p548_p6 = pnand %p547_p4, %p42_p1  ;;  %p26_p8 = scmp.eq.s32.totalorder %s25_s5, 0 }
   0xf   : > { %p36_p9 = scmp.eq.s32.totalorder %s737_s18, 0  ;;  %p41_p10 = scmp.ne.s32.totalorder %s729_s16, %s725_s15 }
  0x10   : > { %550 = dma.hbm_to_vmem [thread:$0]  (!%p548_p6), %s153_s21, 256, %s155_s25, [#allocation6], %s740_s26, %s740_s26, %s741_s27  }
  0x11   : > { %p128_p11 = scmp.eq.s32.totalorder %s798_s22, 1  ;;  %p830_p12 = por %p42_p1, %p41_p10 }
  0x12   : > { %s826_s6 = scalar_select %p26_p8, %s733_s17, %s28_s30  }
  0x13   : > { %p834_p13 = por %p128_p11, %p35_p7  ;;  %p134_p0 = scmp.eq.s32.totalorder %s521_s28, 1 }
  0x14   : > { %p37_p2 = por %p36_p9, %p35_p7  ;;  %s174_s9 = sand.u32 1, %s733_s17  }
  0x15   : > { %p839_p4 = por %p134_p0, %p41_p10  ;;  %p560_p6 = scmp.lt.s32.totalorder %s737_s18, 2 }
  0x16   : > { %s525_s11 = sshll.u32 %s174_s9, 3  ;;  %s526_s12 = sshll.u32 %s737_s18, 3 }
  0x17   : > { %s182_s19 = scalar_lea.hbm %s976_s0, %s526_s12  ;;  %s178_s21 = scalar_lea.vmem [#allocation2], %s525_s11 }
  0x18   : > { %s184_s20 = sshll.u32 %s182_s19, 4  ;;  %s186_s24 = sshll.u32 %s178_s21, 4  ;;  %s185_s20 = int_to_ptr.hbm [resolvable:$true] %s184_s20  ;;  %s187_s24 = int_to_ptr.vmem [resolvable:$true] %s186_s24 }
  0x19   : > { %p848_p8 = pnand %p560_p6, %p37_p2  ;;  %s175_s26 = scalar_lea.sflag [#allocation3], %s174_s9 }
  0x1a   : > { %s637_s27 = sshra.s32 %s185_s20, 4  ;;  %s644_s11 = scalar_lea.hbm %s976_s0, 16  ;;  %s638_s27 = int_to_ptr.hbm [resolvable:$true] %s637_s27 }
  0x1b   : > { %s639_s28 = scalar_lea.hbm %s638_s27, 8  ;;  %p641_p9 = pneg %p848_p8 }
  0x1c   : > { %p640_p7 = scmp.ne.s32.totalorder %s638_s27, %s639_s28  ;;  %p645_p0 = scmp.lt.s32.totalorder %s638_s27, %s976_s0 }
  0x1d   : > { %p646_p2 = scmp.lt.s32.totalorder %s644_s11, %s639_s28 }
  0x1e   : > { %p642_p10 = pnand %p641_p9, %p640_p7 }
  0x1f   : > { %p647_p6 = por %p646_p2, %p645_p0 }
  0x20   : > { %p643_p11 = pneg %p642_p10 }
  0x22   : > { %p648_p5 = pnand %p647_p6, %p643_p11 }
  0x24   : > { %651 = shalt.err (!%p648_p5)
}
  0x25   : > { %554 = dma.hbm_to_vmem [thread:$0]  (!%p848_p8), %s185_s20, 128, %s187_s24, %s175_s26  }
  0x26   : > { %195 = sbr.rel (%p803_p3) target bundleno = 279 (0x117), region = 36  ;;  %s865_s9 = sand.u32 (!%p803_p3), 1, %s729_s16  }
  0x27   : > { %s528_s14 = sshll.u32 (!%p803_p3), %s865_s9, 3  ;;  %s198_s19 = scalar_lea.sflag (!%p803_p3), [#allocation3], %s865_s9 }
  0x28   : > { %s201_s21 = scalar_lea.vmem (!%p803_p3), [#allocation2], %s528_s14 }
  0x2b   : > { %712 = dma.done.wait (%p830_p12), %s198_s19, 128  }
  0x2c   : > { %714 = vsyncadd (%p830_p12), %s198_s19, 4294967168 }
  0x2d   : > { %716 = dma.done.wait (%p42_p1), [#allocation6], 256  }
  0x2e   : > { %718 = vsyncadd (%p42_p1), [#allocation6], 4294967040  ;;  %v234_v0 = vld [vmem:[#allocation5 + $0x8] sm:$0xff]  ;;  %v233_v1 = vld [vmem:[#allocation5] sm:$0xff]  ;;  %vm235_vm0 = vcmask 130048   ;;  %s536_s25 = sshll.u32 %s798_s22, 3 }
  0x2f   : > { %253 = vmatpush.msra.mxu0 %v234_v0  ;;  %v232_v2 = vld [vmem:[%s201_s21] sm:$0xff]  ;;  %v742_v19 = vmov 683565275   ;;  %v743_v21 = vmov 2475754826   ;;  %s436_s28 = scalar_lea.hbm %s980_s4, %s536_s25  ;;  %s231_s30 = scalar_lea.vmem [#allocation7], %s528_s14 }
  0x30   : > { %v605_v3 = vld [vmem:[%s978_s2] ss:$0 sm:$0xff]  ;;  %v744_v24 = vmov 2131351028   ;;  %v745_v27 = vmov 2102212464  }
  0x31   : > { %254 = vmatpush.msra.mxu0 %v233_v1  ;;  %v606_v4 = vld [vmem:[%s979_s3] ss:$0 sm:$0xff]  ;;  %v746_v30 = vmov 920167782   ;;  %v747_v33 = vmov 1326507024  }
  0x32   : > { %531 = vmatmul.msk.f32.vlgmr.msra.gmra.mxu0 %vm235_vm0, %v232_v2  ;;  %s438_s5 = sshll.u32 %s231_s30, 4  ;;  %s440_s11 = sshll.u32 %s436_s28, 4  ;;  %s439_s5 = int_to_ptr.vmem [resolvable:$true] %s438_s5  ;;  %s441_s11 = int_to_ptr.hbm [resolvable:$true] %s440_s11 }
  0x33   : > { %s426_s22 = scalar_lea.sflag [#allocation4], %s865_s9  ;;  %s681_s12 = sshra.s32 %s441_s11, 4  ;;  %s682_s12 = int_to_ptr.hbm [resolvable:$true] %s681_s12 }
  0x34   : > { %s683_s13 = scalar_lea.hbm %s682_s12, 8  ;;  %s687_s21 = scalar_lea.hbm %s980_s4, 16 }
  0x35   : > { %p684_p1 = scmp.ne.s32.totalorder %s682_s12, %s683_s13  ;;  %p688_p12 = scmp.lt.s32.totalorder %s682_s12, %s980_s4 }
  0x36   : > { %p689_p8 = scmp.lt.s32.totalorder %s687_s21, %s683_s13 }
  0x37   : > { %p685_p3 = pnand %p684_p1, %p834_p13 }
  0x38   : > { %p690_p7 = por %p689_p8, %p688_p12 }
  0x39   : > { %p686_p5 = pneg %p685_p3 }
  0x3b   : > { %p691_p9 = pnand %p690_p7, %p686_p5 }
  0xaf   : > { %v256_v5 = vpop.f32.mrf.mxu0 }
  0xb0   : > { %v263_v6 = vmul.f32 %v605_v3, %v256_v5  ;;  %v748_v3 = vmov 0  }
  0xb2   : > { %v885_v7 = vadd.f32 %v606_v4, %v263_v6 }
  0xb4   : > { %v272_v8 = vand.u32 2139095040, %v885_v7  ;;  %v269_v11 = vand.u32 2147483647, %v885_v7  ;;  %vm271_vm13 = vcmp.lt.s32.totalorder %v885_v7, 0 }
  0xb6   : > { %v273_v9 = vshrl.u32 %v272_v8, 23  ;;  %v276_v13 = vand.u32 8388607, %v269_v11  ;;  %vm270_vm14 = vcmp.le.f32.partialorder %v269_v11, 0.7853982 }
  0xb8   : > { %v532_v10 = vadd.s32 4294967169, %v273_v9  ;;  %v277_v17 = vor.u32 8388608, %v276_v13 }
  0xba   : > { %v279_v12 = vadd.s32 1, %v532_v10  ;;  %v902_v40 = vshll.u32 %v277_v17, 8 }
  0xbc   : > { %vm280_vm1 = vcmp.gt.s32.totalorder %v279_v12, 0  ;;  %v318_v49 = vand.u32 65535, %v902_v40  ;;  %v319_v50 = vshrl.u32 %v902_v40, 16 }
  0xbd   : > { %v281_v14 = vsel %vm280_vm1, %v279_v12, 0 }
  0xbe   : > { %v283_v15 = vand.u32 31, %v281_v14  ;;  %v893_v18 = vshrl.u32 %v281_v14, 5 }
  0xc0   : > { %v891_v16 = vsub.s32 32, %v283_v15  ;;  %v286_v20 = vshll.u32 %v742_v19, %v283_v15  ;;  %v289_v22 = vshll.u32 %v743_v21, %v283_v15  ;;  %v292_v26 = vshll.u32 %v744_v24, %v283_v15 }
  0xc1   : > { %v295_v29 = vshll.u32 %v745_v27, %v283_v15  ;;  %v298_v32 = vshll.u32 %v746_v30, %v283_v15  ;;  %vm301_vm2 = vcmp.lt.s32.totalorder %v893_v18, 1  ;;  %vm304_vm3 = vcmp.lt.s32.totalorder %v893_v18, 4 }
  0xc2   : > { %v287_v23 = vshrl.u32 %v743_v21, %v891_v16  ;;  %v290_v25 = vshrl.u32 %v744_v24, %v891_v16  ;;  %v293_v28 = vshrl.u32 %v745_v27, %v891_v16  ;;  %v296_v31 = vshrl.u32 %v746_v30, %v891_v16 }
  0xc3   : > { %v299_v34 = vshrl.u32 %v747_v33, %v891_v16  ;;  %vm303_vm4 = vcmp.lt.s32.totalorder %v893_v18, 3  ;;  %vm302_vm5 = vcmp.lt.s32.totalorder %v893_v18, 2  ;;  %v285_v14 = vshrl.u32 %v742_v19, %v891_v16 }
  0xc4   : > { %v288_v35 = vor.u32 %v287_v23, %v286_v20  ;;  %v291_v36 = vor.u32 %v290_v25, %v289_v22  ;;  %v294_v37 = vor.u32 %v293_v28, %v292_v26  ;;  %v297_v38 = vor.u32 %v296_v31, %v295_v29 }
  0xc5   : > { %v300_v39 = vor.u32 %v299_v34, %v298_v32 }
  0xc6   : > { %v309_v41 = vsel %vm301_vm2, %v288_v35, %v291_v36  ;;  %v313_v42 = vsel %vm301_vm2, %v291_v36, %v294_v37  ;;  %v310_v43 = vsel %vm304_vm3, %v297_v38, 920167782  ;;  %v306_v10 = vsel %vm304_vm3, %v294_v37, 2102212464 }
  0xc7   : > { %v314_v44 = vsel %vm304_vm3, %v300_v39, 1326507024  ;;  %v311_v45 = vsel %vm303_vm4, %v294_v37, %v310_v43  ;;  %v305_v23 = vsel %vm301_vm2, %v285_v14, %v288_v35  ;;  %v307_v24 = vsel %vm303_vm4, %v291_v36, %v306_v10 }
  0xc8   : > { %v315_v46 = vsel %vm303_vm4, %v297_v38, %v314_v44  ;;  %v312_v47 = vsel %vm302_vm5, %v309_v41, %v311_v45  ;;  %v308_v16 = vsel %vm302_vm5, %v305_v23, %v307_v24  ;;  %vm412_vm2 = vweird.f32 %v885_v7 }
  0xc9   : > { %v316_v48 = vsel %vm302_vm5, %v313_v42, %v315_v46  ;;  %v342_v53 = vand.u32 65535, %v312_v47  ;;  %v343_v54 = vshrl.u32 %v312_v47, 16  ;;  %v362_v32 = vmul.u32 %v902_v40, %v308_v16 }
  0xca   : > { %v320_v51 = vand.u32 65535, %v316_v48  ;;  %v321_v52 = vshrl.u32 %v316_v48, 16 }
  0xcb   : > { %v345_v57 = vmul.u32 %v343_v54, %v318_v49  ;;  %v346_v58 = vmul.u32 %v342_v53, %v319_v50  ;;  %v344_v62 = vmul.u32 %v342_v53, %v318_v49  ;;  %v347_v2 = vmul.u32 %v343_v54, %v319_v50 }
  0xcc   : > { %v323_v55 = vmul.u32 %v321_v52, %v318_v49  ;;  %v324_v56 = vmul.u32 %v320_v51, %v319_v50  ;;  %v322_v59 = vmul.u32 %v320_v51, %v318_v49  ;;  %v325_v61 = vmul.u32 %v321_v52, %v319_v50 }
  0xcd   : > { %v348_v63 = vshll.u32 %v345_v57, 16  ;;  %v350_v5 = vshll.u32 %v346_v58, 16  ;;  %v349_v21 = vshrl.u32 %v345_v57, 16  ;;  %v351_v27 = vshrl.u32 %v346_v58, 16 }
  0xce   : > { %v326_v60 = vshll.u32 %v323_v55, 16  ;;  %v328_v0 = vshll.u32 %v324_v56, 16  ;;  %v327_v15 = vshrl.u32 %v323_v55, 16  ;;  %v329_v25 = vshrl.u32 %v324_v56, 16 }
  0xcf   : > { %vm352_vm7 = vc.u32 %v344_v62, %v348_v63  ;;  %v354_v6 = vadd.s32 %v348_v63, %v344_v62 }
  0xd0   : > { %vm330_vm6 = vc.u32 %v322_v59, %v326_v60  ;;  %v332_v1 = vadd.s32 %v326_v60, %v322_v59  ;;  %v353_v9 = vsel %vm352_vm7, 1, %v748_v3 }
  0xd1   : > { %v331_v4 = vsel %vm330_vm6, 1, %v748_v3  ;;  %v355_v13 = vadd.s32 %v353_v9, %v347_v2  ;;  %vm356_vm9 = vc.u32 %v354_v6, %v350_v5  ;;  %v358_v30 = vadd.s32 %v354_v6, %v350_v5 }
  0xd2   : > { %v333_v8 = vadd.s32 %v331_v4, %v325_v61  ;;  %vm334_vm8 = vc.u32 %v332_v1, %v328_v0  ;;  %v357_v20 = vsel %vm356_vm9, 1, %v748_v3 }
  0xd3   : > { %v335_v12 = vsel %vm334_vm8, 1, %v748_v3  ;;  %v359_v22 = vadd.s32 %v357_v20, %v355_v13 }
  0xd4   : > { %v337_v17 = vadd.s32 %v335_v12, %v333_v8 }
  0xd5   : > { %v360_v28 = vadd.s32 %v359_v22, %v349_v21 }
  0xd6   : > { %v338_v26 = vadd.s32 %v337_v17, %v327_v15 }
  0xd7   : > { %v361_v19 = vadd.s32 %v360_v28, %v351_v27 }
  0xd8   : > { %v339_v29 = vadd.s32 %v338_v26, %v329_v25 }
  0xd9   : > { %v365_v31 = vadd.s32 1, %v361_v19 }
  0xda   : > { %vm364_vm10 = vc.u32 %v339_v29, %v358_v30  ;;  %v363_v18 = vadd.s32 %v358_v30, %v339_v29 }
  0xdb   : > { %v366_v33 = vsel %vm364_vm10, %v365_v31, %v361_v19 }
  0xdc   : > { %v367_v34 = vadd.s32 %v366_v33, %v362_v32 }
  0xde   : > { %v368_v35 = vadd.s32 536870912, %v367_v34 }
  0xe0   : > { %v369_v37 = vshrl.u32 %v368_v35, 30 }
  0xe2   : > { %v370_v38 = vshll.u32 %v369_v37, 30  ;;  %v393_v57 = vsub.s32 4, %v369_v37 }
  0xe4   : > { %v371_v36 = vsub.s32 %v367_v34, %v370_v38  ;;  %v394_v62 = vsel %vm271_vm13, %v393_v57, %v369_v37 }
  0xe5   : > { %v396_v1 = vsel %vm270_vm14, 0, %v394_v62 }
  0xe6   : > { %vm372_vm11 = vcmp.lt.s32.totalorder %v371_v36, 0  ;;  %v373_v39 = vsub.s32 0, %v371_v36  ;;  %v413_v6 = vadd.s32 3, %v396_v1 }
  0xe8   : > { %v374_v41 = vsel %vm372_vm11, %v373_v39, %v371_v36  ;;  %v414_v12 = vand.u32 3, %v413_v6 }
  0xe9   : > { %v375_v42 = vclz %v374_v41 }
  0xea   : > { %vm416_vm15 = vcmp.eq.s32.totalorder %v414_v12, 0  ;;  %vm419_vm0 = vcmp.eq.s32.totalorder %v414_v12, 2  ;;  %vm415_vm1 = vcmp.lt.s32.totalorder %v414_v12, 2 }
  0xeb   : > { %v533_v43 = vadd.s32 4294967294, %v375_v42 }
  0xed   : > { %vm534_vm12 = vcmp.lt.s32.totalorder %v533_v43, 0 }
  0xee   : > { %v378_v44 = vsel %vm534_vm12, 0, %v533_v43 }
  0xef   : > { %v379_v45 = vsub.s32 32, %v378_v44  ;;  %v383_v46 = vsub.s32 4294967266, %v378_v44  ;;  %v380_v47 = vshll.u32 %v371_v36, %v378_v44 }
  0xf1   : > { %v381_v48 = vshrl.u32 %v363_v18, %v379_v45  ;;  %v384_v49 = vadd.s32 127, %v383_v46 }
  0xf3   : > { %v382_v40 = vor.u32 %v381_v48, %v380_v47  ;;  %v385_v50 = vshll.u32 %v384_v49, 23 }
  0xf5   : > { %v386_v51 = vor.u32 4788187, %v385_v50  ;;  %v389_v53 = vcvt.s32.f32 %v382_v40 }
  0xf7   : > { %v387_v52 = vand.u32 2147483647, %v386_v51 }
  0xf9   : > { %v390_v54 = vmul.f32 %v389_v53, %v387_v52 }
  0xfb   : > { %v391_v55 = vxor.u32 2147483648, %v390_v54 }
  0xfd   : > { %v392_v56 = vsel %vm271_vm13, %v391_v55, %v390_v54 }
  0xfe   : > { %v395_v58 = vsel %vm270_vm14, %v885_v7, %v392_v56 }
  0xff   : > { %v397_v59 = vmul.f32 %v395_v58, %v395_v58 }
 0x101   : > { %v398_v60 = vmul.f32 -0.001358992, %v397_v59  ;;  %v405_v61 = vmul.f32 -0.00019511016, %v397_v59 }
 0x103   : > { %v399_v63 = vadd.f32 0.041655596, %v398_v60  ;;  %v406_v0 = vadd.f32 0.008332121, %v405_v61 }
 0x105   : > { %v400_v2 = vmul.f32 %v399_v63, %v397_v59  ;;  %v407_v3 = vmul.f32 %v406_v0, %v397_v59 }
 0x107   : > { %v401_v4 = vadd.f32 -0.4999988, %v400_v2  ;;  %v408_v5 = vadd.f32 -0.16666654, %v407_v3 }
 0x109   : > { %v402_v8 = vmul.f32 %v401_v4, %v397_v59  ;;  %v409_v11 = vmul.f32 %v408_v5, %v397_v59 }
 0x10b   : > { %v403_v9 = vadd.f32 1.0, %v402_v8  ;;  %v410_v10 = vadd.f32 1.0, %v409_v11 }
 0x10d   : > { %v411_v13 = vmul.f32 %v410_v10, %v395_v58  ;;  %v420_v14 = vxor.u32 2147483648, %v403_v9 }
 0x10f   : > { %v417_v15 = vxor.u32 2147483648, %v411_v13  ;;  %v421_v20 = vsel %vm419_vm0, %v420_v14, %v411_v13 }
 0x111   : > { %v418_v17 = vsel %vm416_vm15, %v403_v9, %v417_v15 }
 0x112   : > { %v422_v21 = vsel %vm415_vm1, %v418_v17, %v421_v20 }
 0x113   : > { %v423_v22 = vsel %vm412_vm2, nan, %v422_v21 }
 0x114   : > { %424 = vst [vmem:[%s231_s30] sm:$0xff] %v423_v22 }
 0x115   : > { %694 = shalt.err (!%p691_p9)
}
 0x116   : > { %545 = dma.vmem_to_hbm [thread:$0]  (%p834_p13), %s439_s5, 128, %s441_s11, %s426_s22  }
 0x117 PF: > { %s452_s9 = sand.u32 1, %s725_s15   ;;  %p986_p10 = scmp.ge.s32.totalorder %s737_s18, 2 }
 0x118   : > { %s453_s24 = scalar_lea.sflag [#allocation4], %s452_s9 }
 0x119   : > { %p556_p11 = pnand %p986_p10, %p839_p4 }
 0x11b   : > { %p557_p0 = pneg %p556_p11 }
 0x11d   : > { %720 = dma.done.wait (%p557_p0), %s453_s24, 128  }
 0x11e   : > { %722 = vsyncadd (%p557_p0), %s453_s24, 4294967168  ;;  %p18_p2 = scmp.ge.s32.totalorder %s814_s29, 4   ;;  %s987_s15 = smov %s729_s16 }
 0x11f   : > { %s988_s16 = smov %s733_s17  ;;  %s989_s17 = smov %s826_s6 }
 0x120   : > { %s990_s18 = smov %s814_s29  ;;  %20 = sbr.rel (!%p18_p2) target bundleno = 6 (0x6), region = 85 }
 0x125   :  { %459 = vsyncpa [#allocation3], 1 }
 0x126   :  { %461 = vsyncpa [#allocation3 + $0x1], 1 }
 0x127   :  { %462 = vsyncpa [#allocation6], 1 }
 0x128   :  { %463 = vsyncpa [#allocation4], 1 }
 0x129   :  { %465 = vsyncpa [#allocation4 + $0x1], 1 }

</bundles_post_ra>
